<compile_context>
chip_gen: v5e
topology: v5e:2x2
jax: 0.10.0
libtpu: 0.0.40
codegen_flags: <defaults>
</compile_context>

<pallas_src>
import functools

import jax
import jax.numpy as jnp
from jax import lax
from jax.experimental import pallas as pl
from jax.experimental.pallas import tpu as pltpu


# ---------------------------------------------------------------------------
# Main kernel: whole length L resident per block (single pass over x).
# ---------------------------------------------------------------------------
def _dual_se_kernel(x_ref, w1_ref, w2_ref, o_ref, *, inv_len):
    # x_ref : (Bblk, C, L) in the input dtype
    # w1_ref: (H, C) f32 (PyTorch Linear layout: (out_features, in_features))
    # w2_ref: (C, H) f32
    xv = x_ref[...]
    bblk = xv.shape[0]

    # --- Squeeze: f32-accumulated sum + native-dtype max (no full-block f32 copy). ---
    s = jnp.sum(xv, axis=-1, dtype=jnp.float32)          # (Bblk, C)
    mx = jnp.max(xv, axis=-1).astype(jnp.float32)        # (Bblk, C)
    avg = s * inv_len

    # --- Shared MLP once on stacked descriptors (2 matmuls instead of 4). ---
    pooled = jnp.concatenate([avg, mx], axis=0)          # (2*Bblk, C)
    h = lax.dot_general(pooled, w1_ref[...],
                        dimension_numbers=(((1,), (1,)), ((), ())),
                        preferred_element_type=jnp.float32)      # (2*Bblk, H)
    h = jnp.maximum(h, 0.0)        # ReLU; Dropout(0.3) == identity in eval mode
    a = lax.dot_general(h, w2_ref[...],
                        dimension_numbers=(((1,), (1,)), ((), ())),
                        preferred_element_type=jnp.float32)      # (2*Bblk, C)

    # --- Excite: sigmoid gate, broadcast over L, multiply in the input dtype. ---
    attn = jax.nn.sigmoid(a[:bblk] + a[bblk:])           # (Bblk, C) f32
    o_ref[...] = xv * attn.astype(xv.dtype)[:, :, None]


# ---------------------------------------------------------------------------
# Fallback kernels: L tiled (for rows too big to hold resident in VMEM).
# Pass 1: accumulate sum/max over L tiles, run the MLP at the last tile -> attn.
# Pass 2: excite multiply per L tile.
# ---------------------------------------------------------------------------
def _pool_mlp_kernel(x_ref, w1_ref, w2_ref, attn_ref, s_sc, m_sc,
                     *, inv_len, true_len, tile_l, ragged):
    l = pl.program_id(1)
    n_l = pl.num_programs(1)

    @pl.when(l == 0)
    def _():
        s_sc[...] = jnp.zeros_like(s_sc)
        m_sc[...] = jnp.full_like(m_sc, -jnp.inf)

    xv = x_ref[...]                                      # (Bblk, C, tile_l)
    if ragged:
        # Only needed when tile_l does not divide L (garbage lanes in the last tile).
        lane = lax.broadcasted_iota(jnp.int32, xv.shape, 2)
        valid = lane < (true_len - l * tile_l)
        xs = jnp.where(valid, xv, jnp.zeros_like(xv))
        xm = jnp.where(valid, xv, jnp.full_like(xv, -jnp.inf))
    else:
        xs = xv
        xm = xv
    s_sc[...] += jnp.sum(xs, axis=-1, dtype=jnp.float32)
    m_sc[...] = jnp.maximum(m_sc[...], jnp.max(xm, axis=-1).astype(jnp.float32))

    @pl.when(l == n_l - 1)
    def _():
        bblk = s_sc.shape[0]
        avg = s_sc[...] * inv_len
        pooled = jnp.concatenate([avg, m_sc[...]], axis=0)           # (2*Bblk, C)
        h = lax.dot_general(pooled, w1_ref[...],
                            dimension_numbers=(((1,), (1,)), ((), ())),
                            preferred_element_type=jnp.float32)
        h = jnp.maximum(h, 0.0)
        a = lax.dot_general(h, w2_ref[...],
                            dimension_numbers=(((1,), (1,)), ((), ())),
                            preferred_element_type=jnp.float32)
        attn_ref[...] = jax.nn.sigmoid(a[:bblk] + a[bblk:])[:, :, None]


def _excite_kernel(x_ref, attn_ref, o_ref):
    xv = x_ref[...]                                       # (Bblk, C, tile_l)
    o_ref[...] = xv * attn_ref[...].astype(xv.dtype)      # attn: (Bblk, C, 1)


# ---------------------------------------------------------------------------
# Wrapper-side sizing helpers (generation aware).
# ---------------------------------------------------------------------------
def _tpu_vmem_bytes():
    try:
        return int(pltpu.get_tpu_info().vmem_capacity_bytes)
    except Exception:
        return 64 << 20          # conservative (v7x-sized) default


def _num_tensorcores():
    try:
        dev = jax.devices()[0]
        n = getattr(dev, "num_cores", None)
        if n:
            return int(n)
        if "v7" in str(getattr(dev, "device_kind", "")).lower():
            return 2             # v7x megacore: 2 TensorCores per chip
    except Exception:
        pass
    return 1                     # v5e / v6e: single TensorCore


def _pick_bblk(batch, row_bytes, *, num_cores, vmem_bytes):
    scoped = vmem_bytes // 2                                  # usable scoped VMEM
    gen_cap = max(1 << 20, (scoped - (8 << 20)) // 4)         # 2x(in+out) blocks + temps fit
    target = min(4 << 20, gen_cap)                            # ~4 MiB blocks (mem-bound sweet spot)
    bblk = max(1, min(batch, target // row_bytes))
    if bblk >= 8:
        bblk -= bblk % 8         # sublane-aligned -> concat([avg, mx]) needs no relayout
    # Megacore split only where it helps (2 TCs) and only if halves stay DMA-efficient.
    if num_cores >= 2 and batch > 1 and pl.cdiv(batch, bblk) < 2:
        half = pl.cdiv(batch, 2)
        if half * row_bytes >= (512 << 10):
            bblk = half
    return bblk


# ---------------------------------------------------------------------------
# Public entry point.
# ---------------------------------------------------------------------------
def dual_se_block_1d(x, w1, w2):
    """x: (B, C, L); w1: (C//r, C); w2: (C, C//r). Returns (B, C, L) in x.dtype."""
    B, C, L = x.shape
    H = w1.shape[0]
    assert w1.shape == (H, C) and w2.shape == (C, H)

    # Pre-cast weights once in the wrapper (grid-invariant; DMA'd once).
    w1f = w1.astype(jnp.float32)
    w2f = w2.astype(jnp.float32)

    vmem_bytes = _tpu_vmem_bytes()
    num_cores = _num_tensorcores()
    itemsize = jnp.dtype(x.dtype).itemsize
    row_bytes = C * L * itemsize

    # Rows too big to double-buffer with the whole L resident -> L-tiled fallback.
    if row_bytes > max(2 << 20, vmem_bytes // 10):
        return _dual_se_tiled_l(x, w1f, w2f, num_cores=num_cores,
                                vmem_bytes=vmem_bytes)

    bblk = _pick_bblk(B, row_bytes, num_cores=num_cores, vmem_bytes=vmem_bytes)
    grid = (pl.cdiv(B, bblk),)
    block_bytes = bblk * row_bytes
    vmem_limit = int(min(vmem_bytes - (4 << 20),
                         max(32 << 20, 4 * block_bytes + (8 << 20))))

    kernel = functools.partial(_dual_se_kernel, inv_len=1.0 / float(L))
    cost = pl.CostEstimate(
        flops=2 * (2 * B) * C * H * 2 + 4 * B * C * L,     # 2 matmuls on 2B rows + pool/excite
        transcendentals=B * C,                              # sigmoid
        bytes_accessed=2 * B * C * L * itemsize + (w1.size + w2.size) * 4,
    )

    return pl.pallas_call(
        kernel,
        out_shape=jax.ShapeDtypeStruct((B, C, L), x.dtype),
        grid_spec=pltpu.PrefetchScalarGridSpec(
            num_scalar_prefetch=0,
            grid=grid,
            in_specs=[
                pl.BlockSpec((bblk, C, L), lambda b: (b, 0, 0)),   # last dim == full L: no pad
                pl.BlockSpec((H, C), lambda b: (0, 0)),            # grid-invariant weights
                pl.BlockSpec((C, H), lambda b: (0, 0)),
            ],
            out_specs=pl.BlockSpec((bblk, C, L), lambda b: (b, 0, 0)),
        ),
        compiler_params=pltpu.CompilerParams(
            dimension_semantics=("parallel",),
            vmem_limit_bytes=vmem_limit),
        cost_estimate=cost,
    )(x, w1f, w2f)


def _dual_se_tiled_l(x, w1f, w2f, *, num_cores, vmem_bytes):
    """Two-pass path when one row (C*L) is too large to hold resident in VMEM."""
    del num_cores  # batch axis is already "parallel"; nothing extra to gate here.
    B, C, L = x.shape
    H = w1f.shape[0]
    itemsize = jnp.dtype(x.dtype).itemsize

    target = max(1 << 20, min(4 << 20, (vmem_bytes // 2 - (8 << 20)) // 4))
    tile_l = max(128, min(L, (target // (C * itemsize)) // 128 * 128))
    n_l = pl.cdiv(L, tile_l)
    grid = (B, n_l)
    ragged = (L % tile_l) != 0
    block_bytes = C * tile_l * itemsize
    vmem_limit = int(min(vmem_bytes - (4 << 20),
                         max(32 << 20, 4 * block_bytes + (8 << 20))))

    pool_kernel = functools.partial(
        _pool_mlp_kernel, inv_len=1.0 / float(L), true_len=L,
        tile_l=tile_l, ragged=ragged)

    attn = pl.pallas_call(
        pool_kernel,
        out_shape=jax.ShapeDtypeStruct((B, C, 1), jnp.float32),
        grid_spec=pltpu.PrefetchScalarGridSpec(
            num_scalar_prefetch=0,
            grid=grid,
            in_specs=[
                pl.BlockSpec((1, C, tile_l), lambda b, l: (b, 0, l)),
                pl.BlockSpec((H, C), lambda b, l: (0, 0)),
                pl.BlockSpec((C, H), lambda b, l: (0, 0)),
            ],
            out_specs=pl.BlockSpec((1, C, 1), lambda b, l: (b, 0, 0)),
            scratch_shapes=[pltpu.VMEM((1, C), jnp.float32),
                            pltpu.VMEM((1, C), jnp.float32)],
        ),
        compiler_params=pltpu.CompilerParams(
            dimension_semantics=("parallel", "arbitrary"),
            vmem_limit_bytes=vmem_limit),
    )(x, w1f, w2f)

    return pl.pallas_call(
        _excite_kernel,
        out_shape=jax.ShapeDtypeStruct((B, C, L), x.dtype),
        grid_spec=pltpu.PrefetchScalarGridSpec(
            num_scalar_prefetch=0,
            grid=grid,
            in_specs=[
                pl.BlockSpec((1, C, tile_l), lambda b, l: (b, 0, l)),
                pl.BlockSpec((1, C, 1), lambda b, l: (b, 0, 0)),
            ],
            out_specs=pl.BlockSpec((1, C, tile_l), lambda b, l: (b, 0, l)),
        ),
        compiler_params=pltpu.CompilerParams(
            dimension_semantics=("parallel", "parallel"),
            vmem_limit_bytes=vmem_limit),
    )(x, attn)


# ---------------------------------------------------------------------------
# Reference + self-test.
# ---------------------------------------------------------------------------
def reference(x, w1, w2):
    xf = x.astype(jnp.float32)
    avg = jnp.mean(xf, axis=-1)
    mx = jnp.max(xf, axis=-1)

    def mlp(v):
        h = jnp.maximum(v @ w1.astype(jnp.float32).T, 0.0)
        return h @ w2.astype(jnp.float32).T

    attn = jax.nn.sigmoid(mlp(avg) + mlp(mx))
    return (xf * attn[:, :, None]).astype(x.dtype)


if __name__ == "__main__":
    # Module config: channel=32, reduction=16 -> hidden=2.
    # L deliberately NOT a multiple of 128: exercises the no-pad / no-slice path.
    B, C, L, R = 2, 32, 100, 16
    H = C // R

    key = jax.random.PRNGKey(0)
    kx, k1, k2 = jax.random.split(key, 3)
    x = jax.random.normal(kx, (B, C, L), dtype=jnp.float32)
    # Deterministic synthetic weights (PyTorch Linear weight layout: (out, in)).
    w1 = jax.random.normal(k1, (H, C), dtype=jnp.float32) * 0.1
    w2 = jax.random.normal(k2, (C, H), dtype=jnp.float32) * 0.1

    out = jax.block_until_ready(dual_se_block_1d(x, w1, w2))
    ref = reference(x, w1, w2)

    assert out.shape == (B, C, L)
    assert jnp.allclose(out, ref, atol=1e-5, rtol=1e-5), "mismatch vs reference"
    print("KERNEL_OK")
</pallas_src>

<mosaic_0001>
module attributes {stable_mosaic.version = 11 : i64} {
  func.func @_dual_se_kernel(%arg0: i32, %arg1: memref<2x32x100xf32, #tpu.memory_space<vmem>>, %arg2: memref<2x32xf32, #tpu.memory_space<vmem>>, %arg3: memref<32x2xf32, #tpu.memory_space<vmem>>, %arg4: memref<2x32x100xf32, #tpu.memory_space<vmem>>) attributes {dimension_semantics = [#tpu.dimension_semantics<parallel>], iteration_bounds = array<i64: 1>, scalar_prefetch = 0 : i64, scratch_operands = 0 : i64, tpu.core_type = #tpu.core_type<tc>, window_params = [{transform_indices = @transform_0, window_bounds = array<i64: 2, 32, 100>}, {pipeline_mode = #tpu.pipeline_mode<synchronous>, transform_indices = @transform_1, window_bounds = array<i64: 2, 32>}, {pipeline_mode = #tpu.pipeline_mode<synchronous>, transform_indices = @transform_2, window_bounds = array<i64: 32, 2>}, {transform_indices = @transform_3, window_bounds = array<i64: 2, 32, 100>}]} {
    %c0 = arith.constant 0 : index
    %c0_0 = arith.constant 0 : index
    %c0_1 = arith.constant 0 : index
    %0 = vector.load %arg1[%c0, %c0_0, %c0_1] : memref<2x32x100xf32, #tpu.memory_space<vmem>>, vector<2x32x100xf32>
    %cst = arith.constant dense<0.000000e+00> : vector<2x32xf32>
    %1 = vector.multi_reduction <add>, %0, %cst [2] : vector<2x32x100xf32> to vector<2x32xf32>
    %cst_2 = arith.constant dense<0xFF800000> : vector<2x32xf32>
    %2 = vector.multi_reduction <maximumf>, %0, %cst_2 [2] : vector<2x32x100xf32> to vector<2x32xf32>
    %cst_3 = arith.constant 0.00999999977 : f32
    %3 = vector.broadcast %cst_3 : f32 to vector<2x32xf32>
    %4 = arith.mulf %1, %3 : vector<2x32xf32>
    %5 = tpu.concatenate %4, %2 in 0 : vector<2x32xf32>, vector<2x32xf32> -> vector<4x32xf32>
    %c0_4 = arith.constant 0 : index
    %c0_5 = arith.constant 0 : index
    %6 = vector.load %arg2[%c0_4, %c0_5] : memref<2x32xf32, #tpu.memory_space<vmem>>, vector<2x32xf32>
    %cst_6 = arith.constant dense<0.000000e+00> : vector<4x2xf32>
    %7 = tpu.matmul %5, %6, %cst_6 {dimension_numbers = #tpu.dot_dimension_numbers<[1], [1], [0], [0], [0, 0, 1, 0], [], []>} : vector<4x32xf32>, vector<2x32xf32>, vector<4x2xf32> -> vector<4x2xf32>
    %cst_7 = arith.constant 0.000000e+00 : f32
    %8 = vector.broadcast %cst_7 : f32 to vector<4x2xf32>
    %9 = arith.maximumf %7, %8 : vector<4x2xf32>
    %c0_8 = arith.constant 0 : index
    %c0_9 = arith.constant 0 : index
    %10 = vector.load %arg3[%c0_8, %c0_9] : memref<32x2xf32, #tpu.memory_space<vmem>>, vector<32x2xf32>
    %cst_10 = arith.constant dense<0.000000e+00> : vector<4x32xf32>
    %11 = tpu.matmul %9, %10, %cst_10 {dimension_numbers = #tpu.dot_dimension_numbers<[1], [1], [0], [0], [0, 0, 1, 0], [], []>} : vector<4x2xf32>, vector<32x2xf32>, vector<4x32xf32> -> vector<4x32xf32>
    %12 = vector.extract_strided_slice %11 {offsets = [0, 0], sizes = [2, 32], strides = [1, 1]} : vector<4x32xf32> to vector<2x32xf32>
    %13 = vector.extract_strided_slice %11 {offsets = [2, 0], sizes = [2, 32], strides = [1, 1]} : vector<4x32xf32> to vector<2x32xf32>
    %14 = arith.addf %12, %13 : vector<2x32xf32>
    %15 = arith.negf %14 : vector<2x32xf32>
    %16 = math.exp %15 : vector<2x32xf32>
    %cst_11 = arith.constant 1.000000e+00 : f32
    %17 = vector.broadcast %cst_11 : f32 to vector<2x32xf32>
    %18 = arith.addf %17, %16 : vector<2x32xf32>
    %19 = arith.divf %17, %18 : vector<2x32xf32>
    %20 = vector.shape_cast %19 : vector<2x32xf32> to vector<2x32x1xf32>
    %21 = vector.broadcast %20 : vector<2x32x1xf32> to vector<2x32x100xf32>
    %22 = arith.mulf %0, %21 : vector<2x32x100xf32>
    %c0_12 = arith.constant 0 : index
    %c0_13 = arith.constant 0 : index
    %c0_14 = arith.constant 0 : index
    %23 = vector.load %arg4[%c0_12, %c0_13, %c0_14] : memref<2x32x100xf32, #tpu.memory_space<vmem>>, vector<2x32x100xf32>
    tpu.vector_store %arg4[%c0_12, %c0_13, %c0_14], %22 {strides = array<i32>} : memref<2x32x100xf32, #tpu.memory_space<vmem>>, vector<2x32x100xf32>,
    return
  }
  func.func @transform_0(%arg0: i32) -> (i32, i32, i32) {
    %c0_i32 = arith.constant 0 : i32
    %c0_i32_0 = arith.constant 0 : i32
    %c0_i32_1 = arith.constant 0 : i32
    return %arg0, %c0_i32, %c0_i32_0 : i32, i32, i32
  }
  func.func @transform_1(%arg0: i32) -> (i32, i32) {
    %c0_i32 = arith.constant 0 : i32
    %c0_i32_0 = arith.constant 0 : i32
    %c0_i32_1 = arith.constant 0 : i32
    return %c0_i32, %c0_i32_0 : i32, i32
  }
  func.func @transform_2(%arg0: i32) -> (i32, i32) {
    %c0_i32 = arith.constant 0 : i32
    %c0_i32_0 = arith.constant 0 : i32
    %c0_i32_1 = arith.constant 0 : i32
    return %c0_i32, %c0_i32_0 : i32, i32
  }
  func.func @transform_3(%arg0: i32) -> (i32, i32, i32) {
    %c0_i32 = arith.constant 0 : i32
    %c0_i32_0 = arith.constant 0 : i32
    %c0_i32_1 = arith.constant 0 : i32
    return %arg0, %c0_i32, %c0_i32_0 : i32, i32, i32
  }
}

</mosaic_0001>

<bundles_post_ra>
// kernel: tpu_custom_call.1
= control target key start
LH: loop header
LB: loop body
LE: loop exit
PB: predicated region body
PF: predicated region fallthrough
CT: control target
= control target key end

     0   :  { %8 = vsyncpa [#allocation3], 0  ;;  %s545_s0 = inlined_call_operand.hbm [shape: f32[2,32,100], index: 0, kind: input, shape index: {}]   ;;  %s546_s1 = inlined_call_operand.vmem [shape: f32[2,32], index: 1, kind: input, shape index: {}]   ;;  %s547_s2 = inlined_call_operand.vmem [shape: f32[32,2], index: 2, kind: input, shape index: {}]   ;;  %s548_s3 = inlined_call_operand.hbm [shape: f32[2,32,100], index: 3, kind: output, shape index: {}]  }
   0x1   :  { %9 = vsyncpa [#allocation4], 0  ;;  %s14_s14 = sshll.u32 %s545_s0, 4  ;;  %s409_s15 = smov [#allocation2]   ;;  %s15_s14 = int_to_ptr.hbm [resolvable:$true] %s14_s14 }
   0x2   :  { %s16_s16 = sshll.u32 %s409_s15, 4  ;;  %s410_s17 = smov 128   ;;  %s17_s16 = int_to_ptr.vmem [resolvable:$true] %s16_s16 }
   0x3   :  { %s411_s18 = smov 8  }
   0x4   :  { %22 = dma.hbm_to_vmem [thread:$0]  %s15_s14, 1024, %s17_s16, [#allocation3], %s410_s17, %s410_s17, %s411_s18  }
   0x5   :  { %405 = dma.done.wait [#allocation3], 1024  }
   0x6   :  { %406 = vsyncadd [#allocation3], 4294966272  ;;  %vm39_vm0 = vcmask 818176   ;;  %v439_v0 = vld [vmem:[#allocation2 + $0x20] sm:$0xff]  ;;  %v443_v2 = vld [vmem:[#allocation2 + $0x10] sm:$0xff]  ;;  %vm157_vm1 = vcmask 261120   ;;  %v104_v37 = vlaneseq }
   0x7   :  { %v441_v1 = vld [vmem:[#allocation2] sm:$0xff]  ;;  %v52_v3 = vsel %vm39_vm0, %v439_v0, 0.0  ;;  %v46_v5 = vsel %vm39_vm0, %v443_v2, 0.0  ;;  %v451_v6 = vld [vmem:[#allocation2 + $0x28] sm:$0xff]  ;;  %v455_v8 = vld [vmem:[#allocation2 + $0x30] sm:$0xff]  ;;  %v76_v17 = vsel %vm39_vm0, %v439_v0, -inf }
   0x8   :  { %v40_v4 = vsel %vm39_vm0, %v441_v1, 0.0  ;;  %53 = vadd.xlane.f32.xlu1 %v52_v3  ;;  %47 = vadd.xlane.f32.xlu2 %v46_v5  ;;  %v453_v7 = vld [vmem:[#allocation2 + $0x8] sm:$0xff]  ;;  %v55_v9 = vsel %vm39_vm0, %v451_v6, 0.0  ;;  %v58_v11 = vsel %vm39_vm0, %v455_v8, 0.0  ;;  %v463_v12 = vld [vmem:[#allocation2 + $0x38] sm:$0xff]  ;;  %v64_v16 = vsel %vm39_vm0, %v441_v1, -inf }
   0x9   :  { %41 = vadd.xlane.f32.xlu0 %v40_v4  ;;  %v43_v10 = vsel %vm39_vm0, %v453_v7, 0.0  ;;  %v465_v13 = vld [vmem:[#allocation2 + $0x18] sm:$0xff]  ;;  %v61_v14 = vsel %vm39_vm0, %v463_v12, 0.0  ;;  %v67_v18 = vsel %vm39_vm0, %v453_v7, -inf  ;;  %v79_v19 = vsel %vm39_vm0, %v451_v6, -inf  ;;  %v187_v34 = vld [vmem:[%s547_s2 + $0x10] sm:$0xff] }
   0xa   :  { %v49_v15 = vsel %vm39_vm0, %v465_v13, 0.0  ;;  %v82_v20 = vsel %vm39_vm0, %v455_v8, -inf  ;;  %v70_v21 = vsel %vm39_vm0, %v443_v2, -inf  ;;  %v73_v22 = vsel %vm39_vm0, %v465_v13, -inf  ;;  %v156_v30 = vld [vmem:[%s546_s1] sm:$0x3] }
   0xb   :  { %v85_v23 = vsel %vm39_vm0, %v463_v12, -inf  ;;  %333 = vmatpush.xpose.msk.msra.mxu0 %vm157_vm1, %v156_v30  ;;  %v188_v31 = vld [vmem:[%s547_s2 + $0x18] sm:$0xff]  ;;  %vm189_vm2 = vcmask 15360   ;;  %v186_v36 = vld [vmem:[%s547_s2 + $0x8] sm:$0xff]  ;;  %v105_v41 = vand.u32 127, %v104_v37  ;;  %vm109_vm3 = vcmask 130112  }
   0xc   :  { %335 = vmatpush.xpose.msk.msra.mxu1 %vm189_vm2, %v188_v31  ;;  %vm113_vm4 = vcmask 195712   ;;  %vm117_vm5 = vcmask 261312   ;;  %vm126_vm6 = vcmask 1041409   ;;  %vm151_vm7 = vcmask 1043459   ;;  %s320_s30 = sshll.u32 %s548_s3, 4  ;;  %s321_s30 = int_to_ptr.hbm [resolvable:$true] %s320_s30 }
   0xd   :  { %v107_v43 = vadd.s32 4294967288, %v105_v41  ;;  %v111_v47 = vadd.s32 4294967280, %v105_v41  ;;  %v115_v51 = vadd.s32 4294967272, %v105_v41  ;;  %vm154_vm8 = vcmask 1041408  }
  0x10   :  { %56 = vadd.xlane.f32.xlu1 %v55_v9  ;;  %59 = vadd.xlane.f32.xlu2 %v58_v11 }
  0x11   :  { %44 = vadd.xlane.f32.xlu0 %v43_v10  ;;  %336 = vmatpush.xpose.msk.msra.mxu1 %vm189_vm2, %v187_v34 }
  0x15   :  { %337 = vmatpush.xpose.msk.msra.mxu1 %vm189_vm2, %v186_v36 }
  0x18   :  { %62 = vadd.xlane.f32.xlu1 %v61_v14  ;;  %65 = vmax.xlane.f32.xlu2 %v64_v16 }
  0x19   :  { %50 = vadd.xlane.f32.xlu0 %v49_v15 }
  0x20   :  { %77 = vmax.xlane.f32.xlu1 %v76_v17  ;;  %80 = vmax.xlane.f32.xlu2 %v79_v19 }
  0x21   :  { %68 = vmax.xlane.f32.xlu0 %v67_v18 }
  0x28   :  { %83 = vmax.xlane.f32.xlu1 %v82_v20  ;;  %74 = vmax.xlane.f32.xlu2 %v73_v22 }
  0x29   :  { %71 = vmax.xlane.f32.xlu0 %v70_v21 }
  0x31   :  { %86 = vmax.xlane.f32.xlu0 %v85_v23 }
  0x7b   :  { %v54_v24 = vpop.xlane.xlu1 %53  ;;  %v48_v26 = vpop.xlane.xlu2 %47 }
  0x7c   :  { %v42_v25 = vpop.xlane.xlu0 %41  ;;  %v92_v42 = vmul.f32 0.01, %v54_v24  ;;  %v90_v49 = vmul.f32 0.01, %v48_v26 }
  0x7d   :  { %v88_v46 = vmul.f32 0.01, %v42_v25 }
  0x7e   :  { %v119_v48 = vperm.slane %v92_v42, %v105_v41  ;;  %v112_v63 = vperm.slane %v90_v49, %v111_v47 }
  0x7f   :  { %v106_v57 = vperm.slane %v88_v46, %v105_v41 }
  0x83   :  { %v57_v27 = vpop.xlane.xlu1 %56  ;;  %v60_v29 = vpop.xlane.xlu2 %59 }
  0x84   :  { %v45_v28 = vpop.xlane.xlu0 %44  ;;  %v93_v44 = vmul.f32 0.01, %v57_v27  ;;  %v94_v50 = vmul.f32 0.01, %v60_v29 }
  0x85   :  { %v89_v45 = vmul.f32 0.01, %v45_v28 }
  0x86   :  { %v120_v53 = vperm.slane %v93_v44, %v107_v43  ;;  %v122_v3 = vperm.slane %v94_v50, %v111_v47 }
  0x87   :  { %v108_v54 = vperm.slane %v89_v45, %v107_v43 }
  0x88   :  { %v121_v9 = vsel %vm109_vm3, %v120_v53, %v119_v48 }
  0x89   :  { %v110_v10 = vsel %vm109_vm3, %v108_v54, %v106_v57  ;;  %v123_v19 = vsel %vm113_vm4, %v122_v3, %v121_v9 }
  0x8a   :  { %v114_v22 = vsel %vm113_vm4, %v112_v63, %v110_v10 }
  0x8b   :  { %v63_v32 = vpop.xlane.xlu1 %62  ;;  %v66_v35 = vpop.xlane.xlu2 %65 }
  0x8c   :  { %v51_v33 = vpop.xlane.xlu0 %50  ;;  %v95_v55 = vmul.f32 0.01, %v63_v32  ;;  %v137_v58 = vperm.slane %v66_v35, %v105_v41  ;;  %v185_v32 = vld [vmem:[%s547_s2] sm:$0xff]  ;;  %v250_v35 = vshrl.u32 %v104_v37, 7  ;;  %s412_s2 = smov [#allocation5]  }
  0x8d   :  { %v91_v56 = vmul.f32 0.01, %v51_v33  ;;  %338 = vmatpush.xpose.msk.msra.mxu1 %vm189_vm2, %v185_v32  ;;  %s318_s27 = sshll.u32 %s412_s2, 4  ;;  %s319_s27 = int_to_ptr.vmem [resolvable:$true] %s318_s27 }
  0x8e   :  { %v124_v11 = vperm.slane %v95_v55, %v115_v51  ;;  %345 = vset.pattern.permute.xlu1 %v250_v35  ;;  %v263_v36 = vadd.s32 16, %v250_v35  ;;  %v269_v55 = vadd.s32 24, %v250_v35 }
  0x8f   :  { %v116_v14 = vperm.slane %v91_v56, %v115_v51 }
  0x90   :  { %v125_v25 = vsel %vm117_vm5, %v124_v11, %v123_v19  ;;  %347 = vset.pattern.permute.xlu0 %v263_v36 }
  0x91   :  { %v118_v24 = vsel %vm117_vm5, %v116_v14, %v114_v22 }
  0x92   :  { %v127_v29 = vsel %vm126_vm6, %v125_v25, %v118_v24 }
  0x93   :  { %v78_v39 = vpop.xlane.xlu1 %77  ;;  %v81_v40 = vpop.xlane.xlu2 %80 }
  0x94   :  { %v69_v38 = vpop.xlane.xlu0 %68  ;;  %v144_v59 = vperm.slane %v78_v39, %v105_v41  ;;  %v145_v61 = vperm.slane %v81_v40, %v107_v43 }
  0x95   :  { %v138_v60 = vperm.slane %v69_v38, %v107_v43  ;;  %v257_v38 = vadd.s32 8, %v250_v35 }
  0x96   :  { %v146_v17 = vsel %vm109_vm3, %v145_v61, %v144_v59 }
  0x97   :  { %v139_v16 = vsel %vm109_vm3, %v138_v60, %v137_v58  ;;  %346 = vset.pattern.permute.xlu2 %v257_v38 }
  0x9b   :  { %v84_v62 = vpop.xlane.xlu1 %83  ;;  %v75_v5 = vpop.xlane.xlu2 %74 }
  0x9c   :  { %v72_v52 = vpop.xlane.xlu0 %71  ;;  %v147_v15 = vperm.slane %v84_v62, %v111_v47  ;;  %v142_v18 = vperm.slane %v75_v5, %v115_v51 }
  0x9d   :  { %v140_v4 = vperm.slane %v72_v52, %v111_v47 }
  0x9e   :  { %v148_v26 = vsel %vm113_vm4, %v147_v15, %v146_v17 }
  0x9f   :  { %v141_v20 = vsel %vm113_vm4, %v140_v4, %v139_v16 }
  0xa0   :  { %v143_v27 = vsel %vm117_vm5, %v142_v18, %v141_v20 }
  0xa4   :  { %v87_v21 = vpop.xlane.xlu0 %86 }
  0xa5   :  { %v149_v23 = vperm.slane %v87_v21, %v115_v51 }
  0xa7   :  { %v150_v28 = vsel %vm117_vm5, %v149_v23, %v148_v26 }
  0xa8   :  { %v152_v30 = vsel %vm151_vm7, %v150_v28, %v143_v27 }
  0xa9   :  { %v155_v31 = vsel %vm154_vm8, %v127_v29, %v152_v30 }
  0xaa   :  { %334 = vmatmul.msk.f32.vlgmr.msra.gmra.mxu0 %vm157_vm1, %v155_v31 }
 0x127   :  { %v181_v33 = vpop.f32.mrf.mxu0 }
 0x128   :  { %v184_v34 = vmax.f32 %v181_v33, 0.0 }
 0x12a   :  { %339 = vmatmul.msk.f32.vlgmr.msra.gmra.mxu1 %vm189_vm2, %v184_v34 }
 0x1a7   :  { %v222_v39 = vpop.f32.mrf.mxu1 }
 0x1a8   :  { %v226_v40 = vrot.slane %v222_v39, 2 }
 0x1aa   :  { %v228_v41 = vadd.f32 %v226_v40, %v222_v39 }
 0x1ac   :  { %v340_v42 = vmul.f32 -1.442695, %v228_v41 }
 0x1ae   :  { %353 = vpow2.f32 %v340_v42 }
 0x1b4   :  { %v354_v43 = vpop.eup %353 }
 0x1b5   :  { %v232_v44 = vadd.f32 1.0, %v354_v43 }
 0x1b7   :  { %355 = vrcp.f32 %v232_v44  ;;  %v244_v48 = vand.u32 2147483648, %v232_v44  ;;  %v242_v37 = vand.u32 2147483647, %v232_v44  ;;  %vm238_vm10 = vweird.f32 %v232_v44 }
 0x1b9   :  { %v245_v51 = vor.u32 1.1754944e-38, %v244_v48  ;;  %vm243_vm12 = vcmp.eq.f32.partialorder %v242_v37, 8.507059e+37 }
 0x1bd   :  { %v356_v45 = vpop.eup %355 }
 0x1be   :  { %v234_v46 = vmul.f32 %v356_v45, %v232_v44  ;;  %vm239_vm9 = vweird.f32 %v356_v45 }
 0x1bf   :  { %vm240_vm11 = vmor %vm238_vm10, %vm239_vm9 }
 0x1c0   :  { %v235_v47 = vsub.f32 1.0, %v234_v46 }
 0x1c2   :  { %v236_v49 = vmul.f32 %v356_v45, %v235_v47 }
 0x1c4   :  { %v237_v50 = vadd.f32 %v356_v45, %v236_v49 }
 0x1c6   :  { %v241_v52 = vsel %vm240_vm11, %v356_v45, %v237_v50 }
 0x1c7   :  { %v246_v53 = vsel %vm243_vm12, %v245_v51, %v241_v52 }
 0x1c8   :  { %v248_v54 = vperm.slane %v246_v53, 0  ;;  %v273_v56 = vperm.slane %v246_v53, 1 }
 0x1ca   :  { %265 = vperm.xlu0 %347, %v248_v54   ;;  %259 = vperm.xlu2 %346, %v248_v54  }
 0x1cb   :  { %253 = vperm.xlu1 %345, %v248_v54  }
 0x1d2   :  { %348 = vset.pattern.permute.xlu2 %v269_v55  ;;  %352 = vset.pattern.permute.xlu0 %v269_v55 }
 0x1d3   :  { %278 = vperm.xlu1 %345, %v273_v56  }
 0x1da   :  { %271 = vperm.xlu2 %348, %v248_v54  }
 0x1db   :  { %350 = vset.pattern.permute.xlu1 %v263_v36 }
 0x1e2   :  { %349 = vset.pattern.permute.xlu2 %v257_v38 }
 0x1e3   :  { %290 = vperm.xlu1 %350, %v273_v56  }
 0x1ea   :  { %284 = vperm.xlu2 %349, %v273_v56  }
 0x1f2   :  { %351 = vset.pattern.permute.xlu2 %v269_v55 }
 0x1fa   :  { %296 = vperm.xlu2 %351, %v273_v56  }
 0x224   :  { %v260_v57 = vpop.permute.xlu2 %259 }
 0x225   :  { %v299_v58 = vmul.f32 %v260_v57, %v453_v7 }
 0x227   :  { %307 = vst.msk [vmem:[#allocation5 + $0x8] sm:$0xff] %vm39_vm0, %v299_v58 }
 0x234   :  { %v272_v59 = vpop.permute.xlu2 %271 }
 0x235   :  { %v301_v60 = vmul.f32 %v272_v59, %v465_v13 }
 0x237   :  { %309 = vst.msk [vmem:[#allocation5 + $0x18] sm:$0xff] %vm39_vm0, %v301_v60 }
 0x23c   :  { %v266_v61 = vpop.permute.xlu0 %265 }
 0x23d   :  { %v300_v62 = vmul.f32 %v266_v61, %v443_v2  ;;  %v254_v63 = vpop.permute.xlu1 %253 }
 0x23e   :  { %v298_v3 = vmul.f32 %v254_v63, %v441_v1 }
 0x23f   :  { %308 = vst.msk [vmem:[#allocation5 + $0x10] sm:$0xff] %vm39_vm0, %v300_v62 }
 0x240   :  { %306 = vst.msk [vmem:[#allocation5] sm:$0xff] %vm39_vm0, %v298_v3 }
 0x244   :  { %v285_v4 = vpop.permute.xlu2 %284 }
 0x245   :  { %v303_v7 = vmul.f32 %v285_v4, %v451_v6  ;;  %v279_v5 = vpop.permute.xlu1 %278 }
 0x246   :  { %v302_v9 = vmul.f32 %v279_v5, %v439_v0 }
 0x247   :  { %311 = vst.msk [vmem:[#allocation5 + $0x28] sm:$0xff] %vm39_vm0, %v303_v7 }
 0x248   :  { %310 = vst.msk [vmem:[#allocation5 + $0x20] sm:$0xff] %vm39_vm0, %v302_v9 }
 0x254   :  { %v297_v1 = vpop.permute.xlu2 %296 }
 0x255   :  { %v305_v2 = vmul.f32 %v297_v1, %v463_v12  ;;  %v291_v13 = vpop.permute.xlu1 %290 }
 0x256   :  { %v304_v10 = vmul.f32 %v291_v13, %v455_v8 }
 0x257   :  { %313 = vst.msk [vmem:[#allocation5 + $0x38] sm:$0xff] %vm39_vm0, %v305_v2 }
 0x258   :  { %312 = vst.msk [vmem:[#allocation5 + $0x30] sm:$0xff] %vm39_vm0, %v304_v10 }
 0x259   :  { %326 = dma.vmem_to_hbm [thread:$0]  %s319_s27, 1024, %s321_s30, [#allocation4], %s410_s17, %s410_s17, %s411_s18  }
 0x25a   :  { %407 = dma.done.wait [#allocation4], 1024  }
 0x25b   :  { %408 = vsyncadd [#allocation4], 4294966272 }
 0x25c   :  { %331 = vsyncpa [#allocation3], 1 }
 0x25d   :  { %332 = vsyncpa [#allocation4], 1 }

</bundles_post_ra>
